<compile_context>
chip_gen: v7x
topology: tpu7x:2x2x1
jax: 0.10.0
libtpu: 0.0.40
codegen_flags: <defaults>
</compile_context>

<pallas_src>
import math

import numpy as np
import jax
import jax.numpy as jnp
from jax.experimental import pallas as pl
from jax.experimental.pallas import tpu as pltpu


# ----------------------------- operator construction (host-side glue) -------

def _gaussian_1d(sigma, ksize):
    """Normalized 1D Gaussian; outer product of two of these == PyTorch kernel."""
    mean = (ksize - 1) / 2.0
    x = np.arange(ksize, dtype=np.float64)
    g = np.exp(-((x - mean) ** 2) / (2.0 * sigma ** 2))
    return g / g.sum()


def _conv_matrix(size_in, g):
    """(size_in, size_in) matrix == zero-pad(ka,kb) + 'valid' 1D conv."""
    k = g.shape[0]
    ka = k // 2
    kb = ka  # kernel_size is always odd here
    C = np.zeros((size_in, size_in + ka + kb), dtype=np.float64)
    for o in range(size_in):
        C[o, o:o + k] = g
    # zero padding contributes nothing -> drop padded columns
    return C[:, ka:ka + size_in]


def _bilinear_matrix(size_in, size_out):
    """(size_out, size_in) matrix for F.interpolate bilinear, align_corners=True."""
    R = np.zeros((size_out, size_in), dtype=np.float64)
    for i in range(size_out):
        src = i * (size_in - 1) / (size_out - 1) if size_out > 1 else 0.0
        lo = int(math.floor(src))
        hi = min(lo + 1, size_in - 1)
        w = src - lo
        R[i, lo] += 1.0 - w
        R[i, hi] += w
    return R


def _scale_operators(H, W, scale):
    """Build (Ah, AwT) f32 numpy operators + output size for one scale."""
    sigma = (1.0 / scale - 1.0) / 2.0
    ksize = 2 * round(sigma * 4) + 1
    g = _gaussian_1d(sigma, ksize)
    OH = int(math.floor(H * scale))
    OW = int(math.floor(W * scale))
    Ah = _bilinear_matrix(H, OH) @ _conv_matrix(H, g)          # (OH, H)
    Aw = _bilinear_matrix(W, OW) @ _conv_matrix(W, g)          # (OW, W)
    return Ah.astype(np.float32), Aw.T.astype(np.float32), OH, OW


# ----------------------------- sizing helpers --------------------------------

def _vmem_capacity_bytes():
    try:
        return int(pltpu.get_tpu_info().vmem_capacity_bytes)
    except Exception:
        return 64 * 1024 * 1024  # conservative (v7x per-core VMEM)


def _step_vmem_bytes(G, H, W, out_hw, x_bytes):
    """Rough per-grid-step VMEM footprint of the kernel."""
    b = 2 * G * H * W * x_bytes           # double-buffered input block
    b += G * H * W * 2                    # bf16 working copy of the group
    for oh, ow in out_hw:
        b += 2 * (oh * H + W * ow) * 2    # bf16 operator matrices (dbl-buffered)
        b += G * H * ow * (4 + 4 + 2)     # f32 W-side result + lane-fold copy + bf16
        b += oh * G * ow * 4              # f32 H-side result
        b += 2 * oh * G * ow * x_bytes    # double-buffered output slab
    return b


def _choose_group_size(N, H, W, out_hw, x_bytes):
    """Images per grid step.

    Targets, in priority order:
      * G * min(OW) >= 128 folded lanes (full MXU columns, unmasked stores,
        fine for v5e's 128-wide MXU and v6e/v7x alike),
      * per-step input block ~<= 2 MiB (small blocks already hit ~85% of the
        HBM roofline and double-buffer cheaply inside v7x's 64 MiB VMEM),
      * >= 4 grid steps (2 per TensorCore on v7x) so the pipeline overlaps,
      * G divides N so the tail block isn't padded.
    """
    min_ow = min(ow for _, ow in out_hw)
    g = max(1, -(-128 // min_ow))                             # ceil(128/min_ow)
    g = min(g, max(1, (2 * 1024 * 1024) // max(1, H * W * x_bytes)))
    if N >= 4:
        g = min(g, max(1, N // 4))        # >= 4 grid steps (2 per v7x core)
    elif N >= 2:
        g = min(g, (N + 1) // 2)          # at least 2 steps for tiny N
    g = min(g, N)
    g = int(max(1, g))
    if N % g != 0:
        # Prefer a divisor of N (no padded tail block) unless it would give up
        # more than half of the lane fold.
        for d in range(g, 0, -1):
            if N % d == 0:
                if d * 2 >= g:
                    g = d
                break
    # TODO(synk): for very small N (e.g. batch-1, 3-channel inference) add a
    # second grid axis tiling OH so v7x's two TensorCores still get >=2
    # pipelined steps each.
    return g


# ----------------------------- Pallas kernel ---------------------------------

def _make_pyramid_kernel(num_scales, G, H, W, out_hw, out_dtype):
    def kernel(*refs):
        x_ref = refs[0]
        op_refs = refs[1:1 + 2 * num_scales]
        out_refs = refs[1 + 2 * num_scales:]

        # One HBM read of the image group; bf16 MXU inputs, f32 accumulation.
        x2d = x_ref[...].astype(jnp.bfloat16).reshape(G * H, W)   # (G*H, W)

        for s in range(num_scales):
            oh, ow = out_hw[s]
            ah = op_refs[2 * s][...]                              # (oh, H)  bf16
            awt = op_refs[2 * s + 1][...]                         # (W, ow)  bf16

            # W-side blur+resize for the WHOLE group: one (G*H, W) @ (W, ow)
            # MXU matmul (contraction on the minor dim -> no transposes).
            tmp = jnp.dot(x2d, awt,
                          preferred_element_type=jnp.float32)     # (G*H, ow) f32

            # Lane-fold the group: (G, H, ow) -> (H, G*ow).  Single relayout
            # per scale, off the MXU critical path; done in f32 (32-bit
            # relayouts are the robust path) before the bf16 cast.
            tmp = tmp.reshape(G, H, ow)
            tmp = jnp.transpose(tmp, (1, 0, 2)).reshape(H, G * ow)

            # H-side blur+resize: ONE (oh, H) @ (H, G*ow) MXU matmul for the
            # whole group; the result is already the lane-dense output slab.
            res = jnp.dot(ah, tmp.astype(jnp.bfloat16),
                          preferred_element_type=jnp.float32)     # (oh, G*ow)
            out_refs[s][0] = res.astype(out_dtype)
    return kernel


# ----------------------------- fused pyramid builder -------------------------

def _build_pyramid_fn(scales, shape, dtype):
    B, C, H, W = shape
    N = B * C
    x_bytes = np.dtype(dtype).itemsize

    ds_scales = [s for s in scales if float(s) != 1.0]

    if not ds_scales:
        def identity_fn(x):
            return {'prediction_' + str(s).replace('-', '.'): x for s in scales}
        return jax.jit(identity_fn)

    ops = []          # [Ah0, AwT0, Ah1, AwT1, ...] as bf16 device arrays
    out_hw = []
    for s in ds_scales:
        Ah, AwT, OH, OW = _scale_operators(H, W, float(s))
        ops.append(jnp.asarray(Ah, dtype=jnp.bfloat16))
        ops.append(jnp.asarray(AwT, dtype=jnp.bfloat16))
        out_hw.append((OH, OW))

    G = _choose_group_size(N, H, W, out_hw, x_bytes)
    num_groups = -(-N // G)                 # last block may be partial (masked)
    grid = (num_groups,)

    in_specs = [pl.BlockSpec((G, H, W), lambda i: (i, 0, 0))]
    for OH, OW in out_hw:
        # Constant index_map -> fetched once; default buffering (the blocks
        # are tiny; pl.Buffered(1) would only save ~2x their size of VMEM).
        in_specs.append(pl.BlockSpec((OH, H), lambda i: (0, 0)))
        in_specs.append(pl.BlockSpec((W, OW), lambda i: (0, 0)))

    # Lane-dense output: one (OH, G*OW) slab per grid step and scale.
    out_specs = tuple(
        pl.BlockSpec((1, OH, G * OW), lambda i: (i, 0, 0)) for OH, OW in out_hw)
    out_shape = tuple(
        jax.ShapeDtypeStruct((num_groups, OH, G * OW), dtype) for OH, OW in out_hw)

    # Roofline hint so XLA can overlap surrounding work with this call.
    flops = 0
    bytes_acc = N * H * W * x_bytes
    for OH, OW in out_hw:
        flops += 2 * N * H * W * OW + 2 * N * OH * H * OW
        bytes_acc += N * OH * OW * x_bytes + (OH * H + W * OW) * 2
    cost = pl.CostEstimate(flops=flops, transcendentals=0,
                           bytes_accessed=bytes_acc)

    # ~1.5x the per-step footprint (no 32 MiB floor) -- leaves headroom for
    # compiler temporaries while fitting easily in v7x's 64 MiB VMEM.
    vmem_cap = _vmem_capacity_bytes()
    est = _step_vmem_bytes(G, H, W, out_hw, x_bytes)
    vmem_limit = int(min(vmem_cap * 3 // 4, max(8 * 1024 * 1024, est * 3 // 2)))

    kernel = _make_pyramid_kernel(len(ds_scales), G, H, W,
                                  tuple(out_hw), np.dtype(dtype))

    p_call = pl.pallas_call(
        kernel,
        out_shape=out_shape,
        grid_spec=pltpu.PrefetchScalarGridSpec(
            num_scalar_prefetch=0,
            grid=grid,
            in_specs=in_specs,
            out_specs=out_specs,
        ),
        compiler_params=pltpu.CompilerParams(
            dimension_semantics=("parallel",),
            vmem_limit_bytes=vmem_limit,
        ),
        cost_estimate=cost,
    )

    def fn(x):
        xf = x.reshape(N, H, W)
        outs = p_call(xf, *ops)
        if not isinstance(outs, (tuple, list)):
            outs = (outs,)
        result = {}
        for s in scales:
            key = 'prediction_' + str(s).replace('-', '.')
            if float(s) == 1.0:
                result[key] = x
            else:
                idx = ds_scales.index(s)
                OH, OW = out_hw[idx]
                slab = outs[idx]                                 # (ngrp, OH, G*OW)
                y = slab.reshape(num_groups, OH, G, OW)
                y = jnp.transpose(y, (0, 2, 1, 3))
                y = y.reshape(num_groups * G, OH, OW)[:N]
                result[key] = y.reshape(B, C, OH, OW)
        return result

    return jax.jit(fn)


# ----------------------------- public module ---------------------------------

class ImagePyramide:
    """JAX/Pallas equivalent of the PyTorch ImagePyramide module.

    Accepts f32 or bf16 inputs (output dtype follows the input dtype); the
    depthwise Gaussian kernel is identical for every channel, so the
    per-image operator-matrix formulation covers all channels.
    """

    def __init__(self, scales, num_channels):
        self.scales = list(scales)
        self.num_channels = num_channels
        self._fn_cache = {}

    def __call__(self, x):
        key = (tuple(x.shape), str(x.dtype))
        fn = self._fn_cache.get(key)
        if fn is None:
            fn = _build_pyramid_fn(tuple(self.scales), tuple(x.shape), x.dtype)
            self._fn_cache[key] = fn
        return fn(x)


# ----------------------------- demo / smoke test ------------------------------

if __name__ == "__main__":
    k1, k2 = jax.random.split(jax.random.PRNGKey(0))

    # --- check 1: B=2, C=4, 16x16 -> N=8, G=2 (exercises the lane-folded
    #     group matmul and the lane-dense output slab un-interleave) ----------
    B, C, H, W = 2, 4, 16, 16
    x = jax.random.normal(k1, (B, C, H, W), dtype=jnp.float32)

    scales = [1, 0.5, 0.25]
    pyramide = ImagePyramide(scales, num_channels=C)
    outs = pyramide(x)
    jax.block_until_ready(outs)

    assert outs['prediction_1'].shape == (B, C, H, W)
    assert outs['prediction_0.5'].shape == (B, C, 8, 8)
    assert outs['prediction_0.25'].shape == (B, C, 4, 4)
    assert bool(jnp.all(outs['prediction_1'] == x))

    # numerical sanity vs a pure-JAX f32 reference of the same linear operators
    # (kernel uses bf16 MXU inputs with f32 accumulation -> loose tolerance).
    for s in (0.5, 0.25):
        Ah, AwT, OH, OW = _scale_operators(H, W, s)
        ref = jnp.einsum('oh,bchw,wz->bcoz',
                         jnp.asarray(Ah, jnp.float32), x,
                         jnp.asarray(AwT, jnp.float32))
        err = float(jnp.max(jnp.abs(outs['prediction_' + str(s)] - ref)))
        assert err < 1e-1, (s, err)

    # --- check 2: N=13 (prime) with G=3 -> exercises the padded tail block
    #     (partial input block + garbage slab columns sliced away) ------------
    x2 = jax.random.normal(k2, (13, 1, H, W), dtype=jnp.float32)
    pyr2 = ImagePyramide([0.5], num_channels=1)
    outs2 = pyr2(x2)
    jax.block_until_ready(outs2)
    assert outs2['prediction_0.5'].shape == (13, 1, 8, 8)
    Ah, AwT, OH, OW = _scale_operators(H, W, 0.5)
    ref2 = jnp.einsum('oh,bchw,wz->bcoz',
                      jnp.asarray(Ah, jnp.float32), x2,
                      jnp.asarray(AwT, jnp.float32))
    err2 = float(jnp.max(jnp.abs(outs2['prediction_0.5'] - ref2)))
    assert err2 < 1e-1, err2

    print("KERNEL_OK")
</pallas_src>

<mosaic_0001>
module attributes {stable_mosaic.version = 11 : i64} {
  func.func @kernel(%arg0: i32, %arg1: memref<2x16x16xf32, #tpu.memory_space<vmem>>, %arg2: memref<8x16xbf16, #tpu.memory_space<vmem>>, %arg3: memref<16x8xbf16, #tpu.memory_space<vmem>>, %arg4: memref<4x16xbf16, #tpu.memory_space<vmem>>, %arg5: memref<16x4xbf16, #tpu.memory_space<vmem>>, %arg6: memref<1x8x16xf32, #tpu.memory_space<vmem>>, %arg7: memref<1x4x8xf32, #tpu.memory_space<vmem>>) attributes {dimension_semantics = [#tpu.dimension_semantics<parallel>], iteration_bounds = array<i64: 4>, scalar_prefetch = 0 : i64, scratch_operands = 0 : i64, tpu.core_type = #tpu.core_type<tc>, window_params = [{transform_indices = @transform_0, window_bounds = array<i64: 2, 16, 16>}, {pipeline_mode = #tpu.pipeline_mode<synchronous>, transform_indices = @transform_1, window_bounds = array<i64: 8, 16>}, {pipeline_mode = #tpu.pipeline_mode<synchronous>, transform_indices = @transform_2, window_bounds = array<i64: 16, 8>}, {pipeline_mode = #tpu.pipeline_mode<synchronous>, transform_indices = @transform_3, window_bounds = array<i64: 4, 16>}, {pipeline_mode = #tpu.pipeline_mode<synchronous>, transform_indices = @transform_4, window_bounds = array<i64: 16, 4>}, {transform_indices = @transform_5, window_bounds = array<i64: 1, 8, 16>}, {transform_indices = @transform_6, window_bounds = array<i64: 1, 4, 8>}]} {
    %c0 = arith.constant 0 : index
    %c0_0 = arith.constant 0 : index
    %c0_1 = arith.constant 0 : index
    %0 = vector.load %arg1[%c0, %c0_0, %c0_1] : memref<2x16x16xf32, #tpu.memory_space<vmem>>, vector<2x16x16xf32>
    %1 = arith.truncf %0 : vector<2x16x16xf32> to vector<2x16x16xbf16>
    %2 = vector.shape_cast %1 : vector<2x16x16xbf16> to vector<32x16xbf16>
    %c0_2 = arith.constant 0 : index
    %c0_3 = arith.constant 0 : index
    %3 = vector.load %arg2[%c0_2, %c0_3] : memref<8x16xbf16, #tpu.memory_space<vmem>>, vector<8x16xbf16>
    %c0_4 = arith.constant 0 : index
    %c0_5 = arith.constant 0 : index
    %4 = vector.load %arg3[%c0_4, %c0_5] : memref<16x8xbf16, #tpu.memory_space<vmem>>, vector<16x8xbf16>
    %cst = arith.constant dense<0.000000e+00> : vector<32x8xf32>
    %5 = tpu.matmul %2, %4, %cst {dimension_numbers = #tpu.dot_dimension_numbers<[1], [0], [0], [1], [0, 0, 1, 1], [], []>} : vector<32x16xbf16>, vector<16x8xbf16>, vector<32x8xf32> -> vector<32x8xf32>
    %6 = vector.shape_cast %5 : vector<32x8xf32> to vector<2x16x8xf32>
    %7 = tpu.transpose %6, [1, 0, 2] : vector<2x16x8xf32> -> vector<16x2x8xf32>
    %8 = vector.shape_cast %7 : vector<16x2x8xf32> to vector<16x16xf32>
    %9 = arith.truncf %8 : vector<16x16xf32> to vector<16x16xbf16>
    %cst_6 = arith.constant dense<0.000000e+00> : vector<8x16xf32>
    %10 = tpu.matmul %3, %9, %cst_6 {dimension_numbers = #tpu.dot_dimension_numbers<[1], [0], [0], [1], [0, 0, 1, 1], [], []>} : vector<8x16xbf16>, vector<16x16xbf16>, vector<8x16xf32> -> vector<8x16xf32>
    %c0_7 = arith.constant 0 : index
    %c0_8 = arith.constant 0 : index
    %c0_9 = arith.constant 0 : index
    %11 = vector.load %arg6[%c0_7, %c0_8, %c0_9] : memref<1x8x16xf32, #tpu.memory_space<vmem>>, vector<1x8x16xf32>
    %12 = vector.shape_cast %11 : vector<1x8x16xf32> to vector<8x16xf32>
    %13 = vector.shape_cast %10 : vector<8x16xf32> to vector<1x8x16xf32>
    tpu.vector_store %arg6[%c0_7, %c0_8, %c0_9], %13 {strides = array<i32>} : memref<1x8x16xf32, #tpu.memory_space<vmem>>, vector<1x8x16xf32>,
    %c0_10 = arith.constant 0 : index
    %c0_11 = arith.constant 0 : index
    %14 = vector.load %arg4[%c0_10, %c0_11] : memref<4x16xbf16, #tpu.memory_space<vmem>>, vector<4x16xbf16>
    %c0_12 = arith.constant 0 : index
    %c0_13 = arith.constant 0 : index
    %15 = vector.load %arg5[%c0_12, %c0_13] : memref<16x4xbf16, #tpu.memory_space<vmem>>, vector<16x4xbf16>
    %cst_14 = arith.constant dense<0.000000e+00> : vector<32x4xf32>
    %16 = tpu.matmul %2, %15, %cst_14 {dimension_numbers = #tpu.dot_dimension_numbers<[1], [0], [0], [1], [0, 0, 1, 1], [], []>} : vector<32x16xbf16>, vector<16x4xbf16>, vector<32x4xf32> -> vector<32x4xf32>
    %17 = vector.shape_cast %16 : vector<32x4xf32> to vector<2x16x4xf32>
    %18 = tpu.transpose %17, [1, 0, 2] : vector<2x16x4xf32> -> vector<16x2x4xf32>
    %19 = vector.shape_cast %18 : vector<16x2x4xf32> to vector<16x8xf32>
    %20 = arith.truncf %19 : vector<16x8xf32> to vector<16x8xbf16>
    %cst_15 = arith.constant dense<0.000000e+00> : vector<4x8xf32>
    %21 = tpu.matmul %14, %20, %cst_15 {dimension_numbers = #tpu.dot_dimension_numbers<[1], [0], [0], [1], [0, 0, 1, 1], [], []>} : vector<4x16xbf16>, vector<16x8xbf16>, vector<4x8xf32> -> vector<4x8xf32>
    %c0_16 = arith.constant 0 : index
    %c0_17 = arith.constant 0 : index
    %c0_18 = arith.constant 0 : index
    %22 = vector.load %arg7[%c0_16, %c0_17, %c0_18] : memref<1x4x8xf32, #tpu.memory_space<vmem>>, vector<1x4x8xf32>
    %23 = vector.shape_cast %22 : vector<1x4x8xf32> to vector<4x8xf32>
    %24 = vector.shape_cast %21 : vector<4x8xf32> to vector<1x4x8xf32>
    tpu.vector_store %arg7[%c0_16, %c0_17, %c0_18], %24 {strides = array<i32>} : memref<1x4x8xf32, #tpu.memory_space<vmem>>, vector<1x4x8xf32>,
    return
  }
  func.func @transform_0(%arg0: i32) -> (i32, i32, i32) {
    %c0_i32 = arith.constant 0 : i32
    %c0_i32_0 = arith.constant 0 : i32
    %c0_i32_1 = arith.constant 0 : i32
    return %arg0, %c0_i32, %c0_i32_0 : i32, i32, i32
  }
  func.func @transform_1(%arg0: i32) -> (i32, i32) {
    %c0_i32 = arith.constant 0 : i32
    %c0_i32_0 = arith.constant 0 : i32
    %c0_i32_1 = arith.constant 0 : i32
    return %c0_i32, %c0_i32_0 : i32, i32
  }
  func.func @transform_2(%arg0: i32) -> (i32, i32) {
    %c0_i32 = arith.constant 0 : i32
    %c0_i32_0 = arith.constant 0 : i32
    %c0_i32_1 = arith.constant 0 : i32
    return %c0_i32, %c0_i32_0 : i32, i32
  }
  func.func @transform_3(%arg0: i32) -> (i32, i32) {
    %c0_i32 = arith.constant 0 : i32
    %c0_i32_0 = arith.constant 0 : i32
    %c0_i32_1 = arith.constant 0 : i32
    return %c0_i32, %c0_i32_0 : i32, i32
  }
  func.func @transform_4(%arg0: i32) -> (i32, i32) {
    %c0_i32 = arith.constant 0 : i32
    %c0_i32_0 = arith.constant 0 : i32
    %c0_i32_1 = arith.constant 0 : i32
    return %c0_i32, %c0_i32_0 : i32, i32
  }
  func.func @transform_5(%arg0: i32) -> (i32, i32, i32) {
    %c0_i32 = arith.constant 0 : i32
    %c0_i32_0 = arith.constant 0 : i32
    %c0_i32_1 = arith.constant 0 : i32
    return %arg0, %c0_i32, %c0_i32_0 : i32, i32, i32
  }
  func.func @transform_6(%arg0: i32) -> (i32, i32, i32) {
    %c0_i32 = arith.constant 0 : i32
    %c0_i32_0 = arith.constant 0 : i32
    %c0_i32_1 = arith.constant 0 : i32
    return %arg0, %c0_i32, %c0_i32_0 : i32, i32, i32
  }
}

</mosaic_0001>

<bundles_post_ra>
// kernel: fn.1
= control target key start
LH: loop header
LB: loop body
LE: loop exit
PB: predicated region body
PF: predicated region fallthrough
CT: control target
= control target key end

     0   :  { %12 = vsyncpa [#allocation3], 0  ;;  %s1646_s0 = inlined_call_operand.hbm [shape: f32[8,16,16], index: 0, kind: input, shape index: {}]   ;;  %s1647_s1 = inlined_call_operand.hbm [shape: bf16[8,16], index: 1, kind: input, shape index: {}]   ;;  %s1648_s2 = inlined_call_operand.vmem [shape: bf16[16,8], index: 2, kind: input, shape index: {}]   ;;  %s1649_s3 = inlined_call_operand.vmem [shape: bf16[4,16], index: 3, kind: input, shape index: {}]   ;;  %s1650_s4 = inlined_call_operand.vmem [shape: bf16[16,4], index: 4, kind: input, shape index: {}]   ;;  %s1651_s5 = inlined_call_operand.vmem [shape: f32[4,8,16], index: 5, kind: output, shape index: {0}]   ;;  %s1652_s6 = inlined_call_operand.vmem [shape: f32[4,4,8], index: 6, kind: output, shape index: {1}]  }
   0x1   :  { %14 = vsyncpa [#allocation3 + $0x1], 0 }
   0x2   :  { %15 = vsyncpa [#allocation5], 0  ;;  %s1389_s21 = smov 0   ;;  %s1391_s22 = smov 0  }
   0x3   :  { %s1393_s23 = smov 0   ;;  %s1395_s24 = smov 0  }
   0x4 LB: > { %s1408_s25 = sadd.s32 4294967295, %s1342_s24   ;;  %s1411_s26 = sadd.s32 1, %s1342_s24   ;;  %s1342_s24 = sphi %s1395_s24, %s1670_s24   ;;  %s1338_s23 = sphi %s1393_s23, %s1669_s23   ;;  %s1334_s22 = sphi %s1391_s22, %s1668_s22   ;;  %s1330_s21 = sphi %s1389_s21, %s1667_s21  }
   0x5   : > { %s25_s27 = ssub.s32 %s1342_s24, %s1411_s26  ;;  %s28_s28 = sadd.s32 1, %s1338_s23 }
   0x6   : > { %p26_p0 = scmp.eq.s32.totalorder %s25_s27, 0  ;;  %p35_p1 = scmp.ne.s32.totalorder %s1338_s23, %s1334_s22 }
   0x7   : > { %p36_p2 = scmp.eq.s32.totalorder %s1342_s24, 0  ;;  %p41_p3 = scmp.ne.s32.totalorder %s1334_s22, %s1330_s21 }
   0x8   : > { %s1421_s29 = scalar_select %p26_p0, %s1338_s23, %s28_s28  }
   0x9   : > { %p1423_p4 = por %p36_p2, %p35_p1  ;;  %p1653_p5 = scmp.eq.s32.totalorder %s1408_s25, 0 }
   0xa   : > { %p1110_p6 = scmp.ge.s32.totalorder %s1342_s24, 1  ;;  %p188_p7 = scmp.lt.s32.totalorder %s1342_s24, 5 }
   0xb   : > { %p1432_p8 = por %p1653_p5, %p41_p3  ;;  %s1344_s9 = smov [#allocation4]  }
   0xc   : > { %p1436_p9 = pnand %p1110_p6, %p188_p7  ;;  %s201_s10 = sshll.u32 %s1344_s9, 4  ;;  %s202_s10 = int_to_ptr.vmem [resolvable:$true] %s201_s10 }
   0xd   : > { %s1658_s7 = scalar_select %p1432_p8, 1, 0 }
   0xe   : > { %s1659_s8 = scalar_select %p1436_p9, 1, 0 }
   0xf   : > { %p1182_p10 = pneg %p1436_p9  ;;  %p1191_p11 = scmp.lt.s32.totalorder %s1342_s24, 4 }
  0x10   : > { %s221_s11 = sand.u32 1, %s1338_s23   ;;  %s1246_s17 = scalar_lea.hbm %s1647_s1, 64 }
  0x11   : > { %p1446_p12 = pnand %p1182_p10, %p1653_p5  ;;  %p1452_p13 = pnand %p1191_p11, %p1423_p4 }
  0x12   : > { %s1113_s14 = sshll.u32 %s221_s11, 5  ;;  %p1247_p0 = scmp.ne.s32.totalorder %s1647_s1, %s1246_s17 }
  0x13   : > { %s1661_s13 = scalar_select %p1452_p13, 1, 0 }
  0x14   : > { %p1248_p1 = pneg %p1446_p12  ;;  %p1253_p4 = scmp.lt.u32.totalorder %s1246_s17, %s1647_s1 }
  0x16   : > { %p1249_p2 = pnand %p1248_p1, %p1247_p0 }
  0x18   : > { %p1250_p3 = pneg %p1249_p2 }
  0x1a   : > { %p1255_p6 = pnand %p1253_p4, %p1250_p3 }
  0x1c   : > { %1258 = shalt.err (!%p1255_p6)
}
  0x1d   : > { %s1259_s27 = scalar_lea.vmem %s202_s10, 64  ;;  %p1267_p5 = scmp.lt.s32.totalorder %s202_s10, %s202_s10 }
  0x1e   : > { %p1260_p7 = scmp.ne.s32.totalorder %s202_s10, %s1259_s27  ;;  %p1268_p8 = scmp.lt.s32.totalorder %s1259_s27, %s1259_s27 }
  0x20   : > { %p1262_p10 = pnand %p1260_p7, %p1248_p1  ;;  %p1269_p9 = por %p1268_p8, %p1267_p5 }
  0x22   : > { %p1263_p11 = pneg %p1262_p10 }
  0x24   : > { %p1270_p13 = pnand %p1269_p9, %p1263_p11 }
  0x26   : > { %1273 = shalt.err (!%p1270_p13)
}
  0x27   : > { %1185 = dma.hbm_to_vmem [thread:$0]  (!%p1446_p12), %s1647_s1, 64, %s202_s10, [#allocation5]  }
  0x28   : > { %s1141_s9 = sshll.u32 %s1342_s24, 9  ;;  %s225_s18 = scalar_lea.vmem [#allocation2], %s1113_s14 }
  0x29   : > { %s1476_s17 = scalar_lea.hbm %s1646_s0, %s1141_s9  ;;  %s233_s19 = sshll.u32 %s225_s18, 4  ;;  %s1478_s19 = int_to_ptr.vmem [resolvable:$true] %s233_s19 }
  0x2a   : > { %s1480_s12 = scalar_lea.sflag [#allocation3], %s221_s11  ;;  %s1274_s20 = scalar_lea.hbm %s1476_s17, 512 }
  0x2b   : > { %p1275_p5 = scmp.ne.s32.totalorder %s1476_s17, %s1274_s20  ;;  %p1662_p8 = scmp.ne.s32.totalorder %s1661_s13, 0 }
  0x2c   : > { %s1279_s21 = scalar_lea.hbm %s1646_s0, 2048  ;;  %p1280_p0 = scmp.lt.u32.totalorder %s1476_s17, %s1646_s0 }
  0x2d   : > { %p1276_p9 = pneg %p1662_p8  ;;  %p1281_p1 = scmp.lt.u32.totalorder %s1279_s21, %s1274_s20 }
  0x2e   : > { %p1283_p3 = scmp.lt.u32.totalorder %s1274_s20, %s1476_s17 }
  0x2f   : > { %p1277_p12 = pnand %p1276_p9, %p1275_p5  ;;  %p1282_p2 = por %p1281_p1, %p1280_p0 }
  0x31   : > { %p1278_p13 = pneg %p1277_p12  ;;  %p1284_p4 = por %p1283_p3, %p1282_p2 }
  0x33   : > { %p1285_p6 = pnand %p1284_p4, %p1278_p13 }
  0x35   : > { %1288 = shalt.err (!%p1285_p6)
}
  0x36   : > { %s1289_s11 = scalar_lea.vmem %s1478_s19, 512  ;;  %s1345_s14 = smov [#allocation2]  }
  0x37   : > { %p1290_p7 = scmp.ne.s32.totalorder %s1478_s19, %s1289_s11  ;;  %s1294_s30 = sshll.u32 %s1345_s14, 4  ;;  %s1295_s30 = int_to_ptr.vmem [resolvable:$false] %s1294_s30 }
  0x38   : > { %s1296_s9 = scalar_lea.vmem %s1295_s30, 1024  ;;  %p1297_p5 = scmp.lt.s32.totalorder %s1478_s19, %s1295_s30 }
  0x39   : > { %p1292_p10 = pnand %p1290_p7, %p1276_p9  ;;  %p1298_p12 = scmp.lt.s32.totalorder %s1296_s9, %s1289_s11 }
  0x3b   : > { %p1293_p11 = pneg %p1292_p10  ;;  %p1299_p0 = por %p1298_p12, %p1297_p5 }
  0x3d   : > { %p1300_p1 = pnand %p1299_p0, %p1293_p11 }
  0x3f   : > { %1303 = shalt.err (!%p1300_p1)
}
  0x40   : > { %s1346_s15 = smov 128   ;;  %s1347_s16 = smov 8  }
  0x41   : > { %1189 = dma.hbm_to_vmem [thread:$0]  (!%p1662_p8), %s1476_s17, 512, %s1478_s19, %s1480_s12, %s1346_s15, %s1346_s15, %s1347_s16  }
  0x42   : > { %p1663_p9 = scmp.ne.s32.totalorder %s1659_s8, 0 }
  0x43   : > { %s247_s18 = sand.u32 (!%p1663_p9), 1, %s1334_s22   ;;  %p1664_p13 = scmp.ne.s32.totalorder (!%p1663_p9), %s1658_s7, 0 }
  0x44   : > { %245 = sbr.rel (%p1663_p9) target bundleno = 676 (0x2a4), region = 40  ;;  %s1118_s20 = sshll.u32 (!%p1663_p9), %s247_s18, 5 }
  0x45   : > { %s248_s24 = scalar_lea.sflag (!%p1663_p9), [#allocation3], %s247_s18  ;;  %s251_s10 = scalar_lea.vmem (!%p1663_p9), [#allocation2], %s1118_s20 }
  0x4b   : > { %1321 = dma.done.wait (%p1664_p13), %s248_s24, 512  }
  0x4c   : > { %1323 = vsyncadd (%p1664_p13), %s248_s24, 4294966784  ;;  %p1665_p2 = scmp.eq.s32.totalorder %s1408_s25, 0 }
  0x4e   : > { %1325 = dma.done.wait (%p1665_p2), [#allocation5], 64   ;;  %p1666_p3 = pmov %p1665_p2 }
  0x4f   : > { %v1244_v0 = vld [vmem:[%s1648_s2] sm:$0xff]   ;;  %v298_v2 = vld [vmem:[%s251_s10 + $0x8] sm:$0xff]  ;;  %vm312_vm0 = vcmask 130048   ;;  %v299_v3 = vld [vmem:[%s251_s10 + $0x10] sm:$0xff]  ;;  %v1348_v8 = vmov 0.0   ;;  %v372_v11 = vlaneseq  ;;  %vm1351_vm1 = vmmov 0  }
  0x50   : > { %1327 = vsyncadd (%p1666_p3), [#allocation5], 4294967232  ;;  %v297_v1 = vld [vmem:[%s251_s10] sm:$0xff]  ;;  %1152 = vmatprep.subr.bf16.mxu0 %v1244_v0  ;;  %v300_v5 = vld [vmem:[%s251_s10 + $0x18] sm:$0xff]  ;;  %1158 = vmatprep.subr.bf16.mxu1 %v1348_v8  ;;  %v1349_v9 = vmov 1983009808  }
  0x51   : > { %v301_v4 = vpack.c.bf16 %v298_v2, %v297_v1  ;;  %1153 = vmatpush3.bf16.msra.mxu0 %v1244_v0  ;;  %v302_v6 = vpack.c.bf16 %v300_v5, %v299_v3  ;;  %v1245_v7 = vld [vmem:[%s1650_s4] sm:$0xff]   ;;  %v370_v10 = vunpack.c.l.s4 %v1349_v9  ;;  %v373_v13 = vshrl.u32 %v372_v11, 7  ;;  %1160 = vmatprep.mubr.msk.bf16.mxu1 %vm1351_vm1, %v1348_v8  ;;  %s1352_s19 = smov 8   ;;  %s1353_s12 = smov 4  }
  0x52   : > { %1164 = vmatprep.subr.bf16.mxu0 %v1245_v7  ;;  %v1350_v14 = vmov 1934713408   ;;  %vm608_vm2 = vcmask 64512   ;;  %vm954_vm3 = vcmask 31744   ;;  %p288_p8 = scmp.lt.s32.totalorder %s1408_s25, 3  ;;  %vm1001_vm4 = vcmask 60416  }
  0x53   : > { %1154 = vmatprep.mubr.msk.bf16.mxu0 %vm312_vm0, %v301_v4  ;;  %v371_v12 = vunpack.c.0.s8 %v370_v10  ;;  %v401_v15 = vunpack.c.l.s4 %v1350_v14 }
  0x54   : > { %1155 = vmatmul.mubr.msk.bf16.vlgmr.msra.gmra.mrb[0].mxu0 %vm312_vm0, %v302_v6  ;;  %s1672_s25 = smov (!%p288_p8, %s1408_s25), 3 }
  0x55   : > { %1165 = vmatpush3.bf16.msra.mxu0 %v1245_v7  ;;  %1166 = vmatprep.mubr.msk.bf16.mxu0 %vm312_vm0, %v301_v4  ;;  %v1530_v16 = vsub.s32 %v371_v12, %v373_v13  ;;  %v402_v17 = vunpack.c.0.s8 %v401_v15  ;;  %s1120_s28 = sshll.u32 %s1672_s25, 3  ;;  %s1121_s9 = sshll.u32 %s1672_s25, 2 }
  0x56   : > { %s291_s30 = scalar_lea.vmem %s1651_s5, %s1120_s28  ;;  %s295_s18 = scalar_lea.vmem %s1652_s6, %s1121_s9 }
  0x57   : > { %v1536_v24 = vsub.s32 %v402_v17, %v373_v13 }
  0x5c   : > { %1167 = vmatmul.mubr.msk.bf16.vlgmr.msra.gmra.mrb[4].mxu0 %vm312_vm0, %v302_v6 }
 0x127   : > { %v1156_v18 = vpop.f32.mrb[0].mxu0 }
 0x128   : > { %v383_v19 = vcombine.high %v1156_v18, %v1348_v8  ;;  %v390_v20 = vrot.slane %v1156_v18, %v1530_v16  ;;  %v353_v21 = vpop.f32.mrb[1].mxu0 }
 0x129   : > { %v368_v22 = vcombine.high %v353_v21, %v1348_v8  ;;  %v375_v23 = vrot.slane %v353_v21, %v1530_v16  ;;  %v1157_v25 = vpop.f32.mrb[2].mxu0 }
 0x12a   : > { %v397_v26 = vrot.slane %v383_v19, %v1530_v16  ;;  %v449_v27 = vcombine.high %v1157_v25, %v1348_v8  ;;  %v456_v28 = vrot.slane %v1157_v25, %v1530_v16  ;;  %v356_v29 = vpop.f32.mrb[3].mxu0 }
 0x12b   : > { %v382_v30 = vrot.slane %v368_v22, %v1530_v16  ;;  %v398_v31 = vcombine.low %v375_v23, %v390_v20  ;;  %v399_v32 = vcombine.high %v375_v23, %v390_v20  ;;  %v434_v33 = vcombine.high %v356_v29, %v1348_v8 }
 0x12c   : > { %v463_v34 = vrot.slane %v449_v27, %v1530_v16  ;;  %v441_v35 = vrot.slane %v356_v29, %v1530_v16 }
 0x12d   : > { %v406_v36 = vrot.slane %v398_v31, %v1536_v24  ;;  %v413_v37 = vrot.slane %v399_v32, %v1536_v24  ;;  %v414_v38 = vcombine.low %v382_v30, %v397_v26  ;;  %v415_v39 = vcombine.high %v382_v30, %v397_v26 }
 0x12e   : > { %v448_v40 = vrot.slane %v434_v33, %v1530_v16  ;;  %v464_v41 = vcombine.low %v441_v35, %v456_v28  ;;  %v465_v42 = vcombine.high %v441_v35, %v456_v28 }
 0x12f   : > { %v1549_v43 = vrot.slane %v414_v38, %v1536_v24  ;;  %v1552_v44 = vrot.slane %v415_v39, %v1536_v24  ;;  %v500_v45 = vcombine.low %v406_v36, %v413_v37  ;;  %v1125_v46 = vcombine.high %v406_v36, %v413_v37  ;;  %v1168_v47 = vpop.f32.mrb[4].mxu0 }
 0x130   : > { %v1555_v48 = vrot.slane %v464_v41, %v1536_v24  ;;  %v1558_v49 = vrot.slane %v465_v42, %v1536_v24  ;;  %v480_v50 = vcombine.low %v448_v40, %v463_v34  ;;  %v481_v51 = vcombine.high %v448_v40, %v463_v34  ;;  %v699_v52 = vpop.f32.mrb[5].mxu0 }
 0x131   : > { %v516_v53 = vcombine.low %v1549_v43, %v1552_v44  ;;  %v1126_v54 = vcombine.high %v1549_v43, %v1552_v44  ;;  %v729_v55 = vcombine.high %v1168_v47, %v1348_v8  ;;  %v736_v56 = vrot.slane %v1168_v47, %v1530_v16  ;;  %v1169_v57 = vpop.f32.mrb[6].mxu0 }
 0x132   : > { %v488_v58 = vrot.slane %v480_v50, %v1536_v24  ;;  %v495_v59 = vrot.slane %v481_v51, %v1536_v24  ;;  %v550_v60 = vcombine.low %v1555_v48, %v1558_v49  ;;  %v1127_v61 = vcombine.high %v1555_v48, %v1558_v49  ;;  %v702_v62 = vpop.f32.mrb[7].mxu0 }
 0x133   : > { %v743_v63 = vrot.slane %v729_v55, %v1530_v16  ;;  %v714_v0 = vcombine.high %v699_v52, %v1348_v8  ;;  %v721_v1 = vrot.slane %v699_v52, %v1530_v16  ;;  %v795_v2 = vcombine.high %v1169_v57, %v1348_v8 }
 0x134   : > { %v566_v3 = vcombine.low %v488_v58, %v495_v59  ;;  %v1128_v4 = vcombine.high %v488_v58, %v495_v59  ;;  %v802_v5 = vrot.slane %v1169_v57, %v1530_v16  ;;  %v780_v6 = vcombine.high %v702_v62, %v1348_v8 }
 0x135   : > { %v728_v7 = vrot.slane %v714_v0, %v1530_v16  ;;  %v744_v9 = vcombine.low %v721_v1, %v736_v56  ;;  %v745_v10 = vcombine.high %v721_v1, %v736_v56  ;;  %v809_v11 = vrot.slane %v795_v2, %v1530_v16 }
 0x136   : > { %v787_v12 = vrot.slane %v702_v62, %v1530_v16  ;;  %v794_v13 = vrot.slane %v780_v6, %v1530_v16  ;;  %v507_v14 = vrot.slane %v500_v45, %v1530_v16  ;;  %v515_v15 = vrot.slane %v1125_v46, %v1530_v16 }
 0x137   : > { %v752_v17 = vrot.slane %v744_v9, %v1536_v24  ;;  %v759_v18 = vrot.slane %v745_v10, %v1536_v24  ;;  %v760_v19 = vcombine.low %v728_v7, %v743_v63  ;;  %v761_v20 = vcombine.high %v728_v7, %v743_v63 }
 0x138   : > { %v810_v21 = vcombine.low %v787_v12, %v802_v5  ;;  %v811_v22 = vcombine.high %v787_v12, %v802_v5  ;;  %v826_v23 = vcombine.low %v794_v13, %v809_v11  ;;  %v827_v25 = vcombine.high %v794_v13, %v809_v11 }
 0x139   : > { %v768_v26 = vrot.slane %v760_v19, %v1536_v24  ;;  %v775_v27 = vrot.slane %v761_v20, %v1536_v24  ;;  %v846_v28 = vcombine.low %v752_v17, %v759_v18  ;;  %v1133_v29 = vcombine.high %v752_v17, %v759_v18 }
 0x13a   : > { %v818_v30 = vrot.slane %v810_v21, %v1536_v24  ;;  %v825_v31 = vrot.slane %v811_v22, %v1536_v24  ;;  %v834_v32 = vrot.slane %v826_v23, %v1536_v24  ;;  %v841_v33 = vrot.slane %v827_v25, %v1536_v24 }
 0x13b   : > { %v853_v34 = vrot.slane %v846_v28, %v1530_v16  ;;  %v861_v35 = vrot.slane %v1133_v29, %v1530_v16  ;;  %v862_v36 = vcombine.low %v768_v26, %v775_v27  ;;  %v1134_v37 = vcombine.high %v768_v26, %v775_v27  ;;  %v303_v26 = vld [vmem:[#allocation4] sm:$0xf] }
 0x13c   : > { %v896_v38 = vcombine.low %v818_v30, %v825_v31  ;;  %v1135_v39 = vcombine.high %v818_v30, %v825_v31  ;;  %v912_v40 = vcombine.low %v834_v32, %v841_v33  ;;  %v1136_v41 = vcombine.high %v834_v32, %v841_v33  ;;  %v656_v30 = vld [vmem:[%s1649_s3] sm:$0x3] }
 0x13d   : > { %v869_v42 = vrot.slane %v862_v36, %v1530_v16  ;;  %v877_v43 = vrot.slane %v1134_v37, %v1530_v16  ;;  %v523_v44 = vrot.slane %v516_v53, %v1530_v16  ;;  %v531_v45 = vrot.slane %v1126_v54, %v1530_v16 }
 0x13e   : > { %v903_v46 = vrot.slane %v896_v38, %v1530_v16  ;;  %v911_v47 = vrot.slane %v1135_v39, %v1530_v16  ;;  %v919_v48 = vrot.slane %v912_v40, %v1530_v16  ;;  %v927_v49 = vrot.slane %v1136_v41, %v1530_v16 }
 0x13f   : > { %v532_v50 = vcombine.low %v507_v14, %v515_v15  ;;  %v540_v51 = vcombine.low %v523_v44, %v531_v45  ;;  %v557_v52 = vrot.slane %v550_v60, %v1530_v16  ;;  %v565_v55 = vrot.slane %v1127_v61, %v1530_v16 }
 0x140   : > { %v573_v56 = vrot.slane %v566_v3, %v1530_v16  ;;  %v581_v53 = vrot.slane %v1128_v4, %v1530_v16  ;;  %v878_v57 = vcombine.low %v853_v34, %v861_v35  ;;  %v886_v54 = vcombine.low %v869_v42, %v877_v43 }
 0x141   : > { %v539_v58 = vrot.slane %v532_v50, %v1536_v24  ;;  %v547_v59 = vrot.slane %v540_v51, %v1536_v24  ;;  %v582_v62 = vcombine.low %v557_v52, %v565_v55  ;;  %v928_v63 = vcombine.low %v903_v46, %v911_v47 }
 0x142   : > { %v590_v0 = vcombine.low %v573_v56, %v581_v53  ;;  %v885_v1 = vrot.slane %v878_v57, %v1536_v24  ;;  %v893_v2 = vrot.slane %v886_v54, %v1536_v24  ;;  %v936_v60 = vcombine.low %v919_v48, %v927_v49 }
 0x143   : > { %v549_v5 = vcombine.high %v539_v58, %v547_v59  ;;  %v589_v61 = vrot.slane %v582_v62, %v1536_v24  ;;  %v548_v3 = vcombine.low %v539_v58, %v547_v59  ;;  %v935_v6 = vrot.slane %v928_v63, %v1536_v24 }
 0x144   : > { %v597_v16 = vrot.slane %v590_v0, %v1536_v24  ;;  %v895_v4 = vcombine.high %v885_v1, %v893_v2  ;;  %v943_v7 = vrot.slane %v936_v60, %v1536_v24  ;;  %v894_v9 = vcombine.low %v885_v1, %v893_v2 }
 0x146   : > { %v599_v10 = vcombine.high %v589_v61, %v597_v16  ;;  %v945_v11 = vcombine.high %v935_v6, %v943_v7  ;;  %v598_v12 = vcombine.low %v589_v61, %v597_v16  ;;  %v944_v13 = vcombine.low %v935_v6, %v943_v7 }
 0x148   : > { %v1234_v14 = vpack.i.bf16 %v599_v10, %v549_v5  ;;  %v1239_v15 = vpack.i.bf16 %v945_v11, %v895_v4 }
 0x14a   : > { %1235 = vrot.lane.b32.xlu0 %v1234_v14, %s1352_s19 }
 0x14e   : > { %1240 = vrot.lane.b32.xlu0 %v1239_v15, %s1353_s12 }
 0x1bc   : > { %v1236_v17 = vpop.permute.xlu0 %1235 }
 0x1bd   : > { %v1238_v18 = vunpack.i.h.bf16 %v1236_v17  ;;  %v1237_v19 = vunpack.i.l.bf16 %v1236_v17 }
 0x1bf   : > { %v609_v24 = vsel %vm608_vm2, %v548_v3, %v1237_v19  ;;  %v610_v20 = vsel %vm608_vm2, %v598_v12, %v1238_v18 }
 0x1c0   : > { %v611_v21 = vpack.c.bf16 %v610_v20, %v609_v24  ;;  %v1241_v22 = vpop.permute.xlu0 %1240 }
 0x1c1   : > { %v1243_v23 = vunpack.i.h.bf16 %v1241_v22  ;;  %v1242_v25 = vunpack.i.l.bf16 %v1241_v22 }
 0x1c2   : > { %1159 = vmatpush3.bf16.msra.mxu1 %v611_v21 }
 0x1c3   : > { %v956_v27 = vsel %vm954_vm3, %v944_v13, %v1243_v23  ;;  %v955_v28 = vsel %vm954_vm3, %v894_v9, %v1242_v25  ;;  %1170 = vmatprep.subr.bf16.mxu1 %v1348_v8 }
 0x1c4   : > { %v957_v29 = vpack.c.bf16 %v956_v27, %v955_v28 }
 0x1c5   : > { %1161 = vmatmul.mubr.msk.bf16.vlgmr.msra.gmra.mrb[0].mxu1 %vm312_vm0, %v303_v26 }
 0x1c6   : > { %1171 = vmatpush3.bf16.msra.mxu1 %v957_v29  ;;  %1172 = vmatprep.mubr.msk.bf16.mxu1 %vm1351_vm1, %v1348_v8 }
 0x1cd   : > { %1173 = vmatmul.mubr.msk.bf16.vlgmr.msra.gmra.mrb[4].mxu1 %vm312_vm0, %v656_v30 }
 0x298   : > { %v649_v31 = vpop.f32.mrb[0].mxu1 }
 0x299   : > { %655 = vst.msk [vmem:[%s291_s30] sm:$0xff] %vm312_vm0, %v649_v31  ;;  %v1162_v32 = vpop.f32.mrb[1].mxu1 }
 0x29a   : > { %v652_v33 = vpop.f32.mrb[2].mxu1 }
 0x29b   : > { %v1163_v34 = vpop.f32.mrb[3].mxu1 }
 0x2a0   : > { %v995_v8 = vpop.f32.mrb[4].mxu1 }
 0x2a1   : > { %1002 = vst.msk [vmem:[%s295_s18] sm:$0xf] %vm1001_vm4, %v995_v8  ;;  %v1174_v35 = vpop.f32.mrb[5].mxu1 }
 0x2a2   : > { %v998_v36 = vpop.f32.mrb[6].mxu1 }
 0x2a3   : > { %v1175_v37 = vpop.f32.mrb[7].mxu1 }
 0x2a4 PF: > { %p18_p4 = scmp.ge.s32.totalorder %s1411_s26, 6   ;;  %s1667_s21 = smov %s1334_s22 }
 0x2a5   : > { %s1668_s22 = smov %s1338_s23  ;;  %s1669_s23 = smov %s1421_s29 }
 0x2a6   : > { %s1670_s24 = smov %s1411_s26  ;;  %20 = sbr.rel (!%p18_p4) target bundleno = 4 (0x4), region = 96 }
 0x2ad   :  { %1036 = vsyncpa [#allocation3], 1 }
 0x2ae   :  { %1038 = vsyncpa [#allocation3 + $0x1], 1 }
 0x2af   :  { %1039 = vsyncpa [#allocation5], 1 }

</bundles_post_ra>
